<compile_context>
chip_gen: v7x
topology: tpu7x:2x2x1
jax: 0.10.0
libtpu: 0.0.40
codegen_flags: <defaults>
</compile_context>

<pallas_src>
import functools

import numpy as np
import jax
import jax.numpy as jnp
from jax.experimental import pallas as pl
from jax.experimental.pallas import tpu as pltpu


# ----------------------------- Pallas kernel ------------------------------ #
def qfnn_kernel(wv_ref, x_ref, o_ref):
    # wv_ref: (4, 3, 1) f32 VMEM; wv[j, k] = [cos(p0), sin(p0), cos(P), sin(P)]
    #         of block k, with P = p1 + p2 (weight-only trig hoisted out).
    # x_ref:  (12, TB) f32 VMEM; row r = angle_j*3 + block_k, batch on lanes.
    # o_ref:  (6,  TB) f32 VMEM; row r = meas_j*3 + block_k
    #         (meas_j = 0 -> <Z_b1>, meas_j = 1 -> <Z_b2>).
    x = x_ref[...]
    # cos/sin on the whole packed (12, TB) tile: 2 vreg-rows each per 128
    # batch columns — the minimal EUP footprint for this input.
    cx = jnp.cos(x)
    sx = jnp.sin(x)

    c0, s0 = cx[0:3, :], sx[0:3, :]      # RY angle of b1, all 3 blocks
    c1, s1 = cx[3:6, :], sx[3:6, :]      # RZ angle of b1
    c2, s2 = cx[6:9, :], sx[6:9, :]      # RY angle of b2
    s3 = sx[9:12, :]                     # RZ angle of b2

    cp0 = wv_ref[0]                      # (3, 1) — broadcasts over batch lanes
    sp0 = wv_ref[1]
    cP = wv_ref[2]
    sP = wv_ref[3]

    # cos(a1 + p0) via the angle-sum identity: VPU muls against broadcast
    # weight columns, no extra per-element transcendental.
    c1p0 = c1 * cp0 - s1 * sp0

    z_b1 = c0 * c2                                        # (3, TB)
    z_b2 = cP * c2 - (sP * s0) * c1p0 * (s2 * s3)          # (3, TB)

    # One full lane-dense store instead of per-row partial stores.
    o_ref[...] = jnp.concatenate([z_b1, z_b2], axis=0)


# ------------------------------ JAX wrapper -------------------------------- #
@functools.partial(jax.jit, static_argnames=("batch_tile",))
def qfnn_forward(weights, x, *, batch_tile=1024):
    assert x.ndim == 2 and x.shape[1] == 12, "QFNN expects (batch, 12) inputs"
    assert weights.shape == (9,)
    assert batch_tile % 128 == 0, "batch_tile must be a multiple of 128 (lanes)"

    b = x.shape[0]
    x = x.astype(jnp.float32)
    w = weights.astype(jnp.float32)

    # Hoist weight-only trig: wv[:, k] = [cos(p0), sin(p0), cos(P), sin(P)].
    p0 = w[0::3]
    big_p = w[1::3] + w[2::3]
    wv = jnp.stack(
        [jnp.cos(p0), jnp.sin(p0), jnp.cos(big_p), jnp.sin(big_p)], axis=0
    ).reshape(4, 3, 1)

    # Adaptive tile: never larger than the 128-rounded batch, never > batch_tile.
    bt = min(batch_tile, ((b + 127) // 128) * 128)
    pad = (-b) % bt
    if pad:
        x = jnp.pad(x, ((0, pad), (0, 0)))
    bp = x.shape[0]

    # (B, 12) -> (angle, block, B) -> (12, B): batch rides the lane axis and
    # the three blocks sit on adjacent sublanes so they vectorize together.
    xt = x.reshape(bp, 3, 4).transpose(2, 1, 0).reshape(12, bp)

    out_t = pl.pallas_call(
        qfnn_kernel,
        out_shape=jax.ShapeDtypeStruct((6, bp), jnp.float32),
        grid=(bp // bt,),
        in_specs=[
            pl.BlockSpec((4, 3, 1), lambda i: (0, 0, 0)),   # weight trig table
            pl.BlockSpec((12, bt), lambda i: (0, i)),       # x tile
        ],
        out_specs=pl.BlockSpec((6, bt), lambda i: (0, i)),
        compiler_params=pltpu.CompilerParams(
            dimension_semantics=("parallel",)   # shards across TCs on v7x
        ),
    )(wv, xt)

    # Rows are (meas_j, block_k); reorder to the module's per-qubit (B, 6).
    out = out_t.reshape(2, 3, bp).transpose(2, 1, 0).reshape(bp, 6)
    return out[:b]


# --------------------- dense statevector reference ------------------------- #
def _ry(t):
    c, s = np.cos(t / 2), np.sin(t / 2)
    return np.array([[c, -s], [s, c]], dtype=np.complex128)


def _rz(t):
    return np.array(
        [[np.exp(-1j * t / 2), 0.0], [0.0, np.exp(1j * t / 2)]],
        dtype=np.complex128,
    )


_I2 = np.eye(2, dtype=np.complex128)
_Z = np.diag([1.0, -1.0]).astype(np.complex128)
# CNOT with control = LSB qubit (b2), target = MSB qubit (b1), basis |b1 b2>
_CNOT = np.array(
    [[1, 0, 0, 0], [0, 0, 0, 1], [0, 0, 1, 0], [0, 1, 0, 0]], dtype=np.complex128
)


def qfnn_reference(weights, x):
    """Exact simulation of qfnn6 (per independent 2-qubit block)."""
    w = np.asarray(weights, np.float64)
    xs = np.asarray(x, np.float64)
    batch = xs.shape[0]
    out = np.zeros((batch, 6), dtype=np.float64)
    ket0 = np.array([1.0, 0.0], dtype=np.complex128)
    for bidx in range(batch):
        for k in range(3):
            a0, a1, a2, a3 = xs[bidx, 4 * k : 4 * k + 4]
            p0, p1, p2 = w[3 * k : 3 * k + 3]
            psi1 = _rz(a1) @ _ry(a0) @ ket0  # wire b1 (MSB)
            psi2 = _rz(a3) @ _ry(a2) @ ket0  # wire b2 (LSB)
            psi = np.kron(psi1, psi2)
            u = (
                np.kron(_rz(np.pi / 2), _I2)
                @ np.kron(_I2, _ry(p2))
                @ np.kron(_I2, _ry(p1))
                @ _CNOT
                @ np.kron(_rz(p0), _I2)
                @ np.kron(_I2, _rz(-np.pi / 2))
            )
            psi = u @ psi
            out[bidx, 2 * k] = np.real(psi.conj() @ (np.kron(_Z, _I2) @ psi))
            out[bidx, 2 * k + 1] = np.real(psi.conj() @ (np.kron(_I2, _Z) @ psi))
    return out


# ---------------------------------- main ----------------------------------- #
if __name__ == "__main__":
    key = jax.random.PRNGKey(0)
    kx, kw = jax.random.split(key)

    batch = 8
    x = jax.random.uniform(
        kx, (batch, 12), dtype=jnp.float32, minval=-jnp.pi, maxval=jnp.pi
    )
    # TorchLayer's default init for weight_shapes={'weights': 9} is U(0, 2*pi).
    weights = jax.random.uniform(
        kw, (9,), dtype=jnp.float32, minval=0.0, maxval=2.0 * jnp.pi
    )

    out = qfnn_forward(weights, x)
    out = jax.block_until_ready(out)

    ref = qfnn_reference(weights, x)
    np.testing.assert_allclose(np.asarray(out), ref, rtol=1e-4, atol=1e-5)

    print("KERNEL_OK")
</pallas_src>

<mosaic_0001>
module attributes {stable_mosaic.version = 11 : i64} {
  func.func @qfnn_kernel(%arg0: i32, %arg1: memref<4x3x1xf32, #tpu.memory_space<vmem>>, %arg2: memref<12x128xf32, #tpu.memory_space<vmem>>, %arg3: memref<6x128xf32, #tpu.memory_space<vmem>>) attributes {dimension_semantics = [#tpu.dimension_semantics<parallel>], iteration_bounds = array<i64: 1>, scalar_prefetch = 0 : i64, scratch_operands = 0 : i64, tpu.core_type = #tpu.core_type<tc>, window_params = [{pipeline_mode = #tpu.pipeline_mode<synchronous>, transform_indices = @transform_0, window_bounds = array<i64: 4, 3, 1>}, {transform_indices = @transform_1, window_bounds = array<i64: 12, 128>}, {transform_indices = @transform_2, window_bounds = array<i64: 6, 128>}]} {
    %c0 = arith.constant 0 : index
    %c0_0 = arith.constant 0 : index
    %0 = vector.load %arg2[%c0, %c0_0] : memref<12x128xf32, #tpu.memory_space<vmem>>, vector<12x128xf32>
    %1 = math.cos %0 : vector<12x128xf32>
    %2 = math.sin %0 : vector<12x128xf32>
    %3 = vector.extract_strided_slice %1 {offsets = [0, 0], sizes = [3, 128], strides = [1, 1]} : vector<12x128xf32> to vector<3x128xf32>
    %4 = vector.extract_strided_slice %2 {offsets = [0, 0], sizes = [3, 128], strides = [1, 1]} : vector<12x128xf32> to vector<3x128xf32>
    %5 = vector.extract_strided_slice %1 {offsets = [3, 0], sizes = [3, 128], strides = [1, 1]} : vector<12x128xf32> to vector<3x128xf32>
    %6 = vector.extract_strided_slice %2 {offsets = [3, 0], sizes = [3, 128], strides = [1, 1]} : vector<12x128xf32> to vector<3x128xf32>
    %7 = vector.extract_strided_slice %1 {offsets = [6, 0], sizes = [3, 128], strides = [1, 1]} : vector<12x128xf32> to vector<3x128xf32>
    %8 = vector.extract_strided_slice %2 {offsets = [6, 0], sizes = [3, 128], strides = [1, 1]} : vector<12x128xf32> to vector<3x128xf32>
    %9 = vector.extract_strided_slice %2 {offsets = [9, 0], sizes = [3, 128], strides = [1, 1]} : vector<12x128xf32> to vector<3x128xf32>
    %c0_1 = arith.constant 0 : index
    %c0_2 = arith.constant 0 : index
    %c0_3 = arith.constant 0 : index
    %10 = vector.load %arg1[%c0_1, %c0_2, %c0_3] : memref<4x3x1xf32, #tpu.memory_space<vmem>>, vector<1x3x1xf32>
    %11 = vector.shape_cast %10 : vector<1x3x1xf32> to vector<3x1xf32>
    %c1 = arith.constant 1 : index
    %c0_4 = arith.constant 0 : index
    %c0_5 = arith.constant 0 : index
    %12 = vector.load %arg1[%c1, %c0_4, %c0_5] : memref<4x3x1xf32, #tpu.memory_space<vmem>>, vector<1x3x1xf32>
    %13 = vector.shape_cast %12 : vector<1x3x1xf32> to vector<3x1xf32>
    %c2 = arith.constant 2 : index
    %c0_6 = arith.constant 0 : index
    %c0_7 = arith.constant 0 : index
    %14 = vector.load %arg1[%c2, %c0_6, %c0_7] : memref<4x3x1xf32, #tpu.memory_space<vmem>>, vector<1x3x1xf32>
    %15 = vector.shape_cast %14 : vector<1x3x1xf32> to vector<3x1xf32>
    %c3 = arith.constant 3 : index
    %c0_8 = arith.constant 0 : index
    %c0_9 = arith.constant 0 : index
    %16 = vector.load %arg1[%c3, %c0_8, %c0_9] : memref<4x3x1xf32, #tpu.memory_space<vmem>>, vector<1x3x1xf32>
    %17 = vector.shape_cast %16 : vector<1x3x1xf32> to vector<3x1xf32>
    %18 = vector.broadcast %11 : vector<3x1xf32> to vector<3x128xf32>
    %19 = arith.mulf %5, %18 : vector<3x128xf32>
    %20 = vector.broadcast %13 : vector<3x1xf32> to vector<3x128xf32>
    %21 = arith.mulf %6, %20 : vector<3x128xf32>
    %22 = arith.subf %19, %21 : vector<3x128xf32>
    %23 = arith.mulf %3, %7 : vector<3x128xf32>
    %24 = vector.broadcast %15 : vector<3x1xf32> to vector<3x128xf32>
    %25 = arith.mulf %24, %7 : vector<3x128xf32>
    %26 = vector.broadcast %17 : vector<3x1xf32> to vector<3x128xf32>
    %27 = arith.mulf %26, %4 : vector<3x128xf32>
    %28 = arith.mulf %27, %22 : vector<3x128xf32>
    %29 = arith.mulf %8, %9 : vector<3x128xf32>
    %30 = arith.mulf %28, %29 : vector<3x128xf32>
    %31 = arith.subf %25, %30 : vector<3x128xf32>
    %32 = tpu.concatenate %23, %31 in 0 : vector<3x128xf32>, vector<3x128xf32> -> vector<6x128xf32>
    %c0_10 = arith.constant 0 : index
    %c0_11 = arith.constant 0 : index
    %33 = vector.load %arg3[%c0_10, %c0_11] : memref<6x128xf32, #tpu.memory_space<vmem>>, vector<6x128xf32>
    tpu.vector_store %arg3[%c0_10, %c0_11], %32 {strides = array<i32>} : memref<6x128xf32, #tpu.memory_space<vmem>>, vector<6x128xf32>,
    return
  }
  func.func @transform_0(%arg0: i32) -> (i32, i32, i32) {
    %c0_i32 = arith.constant 0 : i32
    %c0_i32_0 = arith.constant 0 : i32
    %c0_i32_1 = arith.constant 0 : i32
    %c0_i32_2 = arith.constant 0 : i32
    return %c0_i32, %c0_i32_0, %c0_i32_1 : i32, i32, i32
  }
  func.func @transform_1(%arg0: i32) -> (i32, i32) {
    %c0_i32 = arith.constant 0 : i32
    %c0_i32_0 = arith.constant 0 : i32
    return %c0_i32, %arg0 : i32, i32
  }
  func.func @transform_2(%arg0: i32) -> (i32, i32) {
    %c0_i32 = arith.constant 0 : i32
    %c0_i32_0 = arith.constant 0 : i32
    return %c0_i32, %arg0 : i32, i32
  }
}

</mosaic_0001>

<bundles_post_ra>
// kernel: qfnn_forward.1
= control target key start
LH: loop header
LB: loop body
LE: loop exit
PB: predicated region body
PF: predicated region fallthrough
CT: control target
= control target key end

     0   :  { %v540_v0 = vmov 0   ;;  %v541_v27 = vmov 683565275   ;;  %v542_v29 = vmov 2475754826   ;;  %s667_s0 = inlined_call_operand.vmem [shape: f32[4,3,1], index: 0, kind: input, shape index: {}]   ;;  %s668_s1 = inlined_call_operand.vmem [shape: f32[12,128], index: 1, kind: input, shape index: {}]   ;;  %s669_s2 = inlined_call_operand.vmem [shape: f32[6,128], index: 2, kind: output, shape index: {}]  }
   0x1   :  { %530 = vset.pattern.permute.xlu0 %v540_v0  ;;  %v427_v1 = vld [vmem:[%s667_s0] sm:$0x7]  ;;  %531 = vset.pattern.permute.xlu1 %v540_v0  ;;  %v514_v2 = vld [vmem:[%s667_s0 + $0xc] sm:$0x7]  ;;  %v512_v3 = vld [vmem:[%s667_s0 + $0x4] sm:$0x7] }
   0x2   :  { %436 = vperm.xlu0 %530, %v427_v1   ;;  %465 = vperm.xlu1 %531, %v514_v2   ;;  %v513_v4 = vld [vmem:[%s667_s0 + $0x8] sm:$0x7]  ;;  %v577_v5 = vld [vmem:[%s668_s1] sm:$0xff]  ;;  %v543_v31 = vmov 2131351028  }
   0x3   :  { %v582_v6 = vld [vmem:[%s668_s1 + $0x8] sm:$0xf]  ;;  %v13_v7 = vand.u32 2147483647, %v577_v5  ;;  %v16_v8 = vand.u32 2139095040, %v577_v5 }
   0x4   :  { %v116_v11 = vand.u32 2147483647, %v582_v6  ;;  %v119_v12 = vand.u32 2139095040, %v582_v6  ;;  %v544_v33 = vmov 2102212464   ;;  %vm118_vm14 = vcmp.lt.s32.totalorder %v582_v6, 0 }
   0x5   :  { %v17_v9 = vshrl.u32 %v16_v8, 23  ;;  %v20_v10 = vand.u32 8388607, %v13_v7  ;;  %v545_v35 = vmov 920167782  }
   0x6   :  { %443 = vperm.xlu0 %530, %v512_v3   ;;  %459 = vperm.xlu1 %531, %v513_v4   ;;  %v120_v14 = vshrl.u32 %v119_v12, 23  ;;  %v123_v15 = vand.u32 8388607, %v116_v11  ;;  %v546_v42 = vmov 1326507024  }
   0x7   :  { %v496_v13 = vadd.s32 4294967169, %v17_v9  ;;  %v21_v17 = vor.u32 8388608, %v20_v10  ;;  %vm117_vm15 = vcmp.le.f32.partialorder %v116_v11, 0.7853982 }
   0x8   :  { %v500_v18 = vadd.s32 4294967169, %v120_v14  ;;  %v124_v19 = vor.u32 8388608, %v123_v15 }
   0x9   :  { %v23_v16 = vadd.s32 1, %v496_v13  ;;  %v592_v24 = vshll.u32 %v21_v17, 8 }
   0xa   :  { %v126_v21 = vadd.s32 1, %v500_v18  ;;  %v594_v25 = vshll.u32 %v124_v19, 8 }
   0xb   :  { %vm24_vm0 = vcmp.gt.s32.totalorder %v23_v16, 0 }
   0xc   :  { %v25_v20 = vsel %vm24_vm0, %v23_v16, 0  ;;  %vm127_vm2 = vcmp.gt.s32.totalorder %v126_v21, 0  ;;  %vm15_vm0 = vcmp.lt.s32.totalorder %v577_v5, 0 }
   0xd   :  { %v26_v22 = vshrl.u32 %v25_v20, 5  ;;  %v27_v23 = vand.u32 31, %v25_v20  ;;  %v128_v47 = vsel %vm127_vm2, %v126_v21, 0 }
   0xe   :  { %v130_v50 = vand.u32 31, %v128_v47  ;;  %v129_v61 = vshrl.u32 %v128_v47, 5 }
   0xf   :  { %v28_v26 = vsub.s32 32, %v27_v23  ;;  %v30_v28 = vshll.u32 %v541_v27, %v27_v23  ;;  %v33_v30 = vshll.u32 %v542_v29, %v27_v23  ;;  %v36_v32 = vshll.u32 %v543_v31, %v27_v23 }
  0x10   :  { %v39_v34 = vshll.u32 %v544_v33, %v27_v23  ;;  %v42_v36 = vshll.u32 %v545_v35, %v27_v23  ;;  %vm45_vm1 = vcmp.lt.s32.totalorder %v26_v22, 1  ;;  %vm46_vm3 = vcmp.lt.s32.totalorder %v26_v22, 2 }
  0x11   :  { %v29_v37 = vshrl.u32 %v541_v27, %v28_v26  ;;  %v31_v38 = vshrl.u32 %v542_v29, %v28_v26  ;;  %v34_v39 = vshrl.u32 %v543_v31, %v28_v26  ;;  %v37_v40 = vshrl.u32 %v544_v33, %v28_v26 }
  0x12   :  { %v40_v41 = vshrl.u32 %v545_v35, %v28_v26  ;;  %v43_v43 = vshrl.u32 %v546_v42, %v28_v26  ;;  %vm48_vm4 = vcmp.lt.s32.totalorder %v26_v22, 4  ;;  %vm47_vm5 = vcmp.lt.s32.totalorder %v26_v22, 3 }
  0x13   :  { %v32_v44 = vor.u32 %v31_v38, %v30_v28  ;;  %v35_v45 = vor.u32 %v34_v39, %v33_v30  ;;  %v38_v46 = vor.u32 %v37_v40, %v36_v32  ;;  %v131_v58 = vsub.s32 32, %v130_v50 }
  0x14   :  { %v41_v48 = vor.u32 %v40_v41, %v39_v34  ;;  %v44_v49 = vor.u32 %v43_v43, %v42_v36  ;;  %v136_v62 = vshll.u32 %v542_v29, %v130_v50  ;;  %v139_v12 = vshll.u32 %v543_v31, %v130_v50 }
  0x15   :  { %v49_v51 = vsel %vm45_vm1, %v29_v37, %v32_v44  ;;  %v50_v52 = vsel %vm48_vm4, %v38_v46, 2102212464  ;;  %v53_v53 = vsel %vm45_vm1, %v32_v44, %v35_v45  ;;  %v57_v54 = vsel %vm45_vm1, %v35_v45, %v38_v46 }
  0x16   :  { %v51_v55 = vsel %vm47_vm5, %v35_v45, %v50_v52  ;;  %v54_v56 = vsel %vm48_vm4, %v41_v48, 920167782  ;;  %v58_v57 = vsel %vm48_vm4, %v44_v49, 1326507024  ;;  %v137_v2 = vshrl.u32 %v543_v31, %v131_v58 }
  0x17   :  { %v55_v59 = vsel %vm47_vm5, %v38_v46, %v54_v56  ;;  %v59_v60 = vsel %vm47_vm5, %v41_v48, %v58_v57  ;;  %v52_v63 = vsel %vm46_vm3, %v49_v51, %v51_v55  ;;  %v140_v13 = vshrl.u32 %v544_v33, %v131_v58 }
  0x18   :  { %v56_v0 = vsel %vm46_vm3, %v53_v53, %v55_v59  ;;  %v60_v1 = vsel %vm46_vm3, %v57_v54, %v59_v60  ;;  %v138_v10 = vor.u32 %v137_v2, %v136_v62  ;;  %v142_v14 = vshll.u32 %v544_v33, %v130_v50 }
  0x19   :  { %v608_v3 = vmul.u32.u64.low %v592_v24, %v60_v1  ;;  %v609_v4 = vmul.u32.u64.high %v592_v24, %v60_v1, %v608_v3  ;;  %v612_v8 = vmul.u32.u64.low %v592_v24, %v56_v0  ;;  %v613_v9 = vmul.u32.u64.high %v592_v24, %v56_v0, %v612_v8 }
  0x1a   :  { %v143_v15 = vshrl.u32 %v545_v35, %v131_v58  ;;  %v145_v16 = vshll.u32 %v545_v35, %v130_v50  ;;  %v146_v17 = vshrl.u32 %v546_v42, %v131_v58  ;;  %vm148_vm6 = vcmp.lt.s32.totalorder %v129_v61, 1 }
  0x1b   :  { %v68_v18 = vmul.u32 %v592_v24, %v52_v63  ;;  %v141_v19 = vor.u32 %v140_v13, %v139_v12  ;;  %vm150_vm7 = vcmp.lt.s32.totalorder %v129_v61, 3  ;;  %vm151_vm8 = vcmp.lt.s32.totalorder %v129_v61, 4 }
  0x1c   :  { %vm70_vm9 = vc.u32 %v609_v4, %v612_v8  ;;  %v71_v20 = vadd.s32 1, %v613_v9  ;;  %v144_v21 = vor.u32 %v143_v15, %v142_v14  ;;  %v132_v22 = vshrl.u32 %v541_v27, %v131_v58 }
  0x1d   :  { %v147_v23 = vor.u32 %v146_v17, %v145_v16  ;;  %v160_v26 = vsel %vm148_vm6, %v138_v10, %v141_v19  ;;  %v133_v28 = vshll.u32 %v541_v27, %v130_v50  ;;  %v134_v30 = vshrl.u32 %v542_v29, %v131_v58 }
  0x1e   :  { %v72_v24 = vsel %vm70_vm9, %v71_v20, %v613_v9  ;;  %v157_v31 = vsel %vm151_vm8, %v144_v21, 920167782  ;;  %vm149_vm10 = vcmp.lt.s32.totalorder %v129_v61, 2  ;;  %v153_v32 = vsel %vm151_vm8, %v141_v19, 2102212464 }
  0x1f   :  { %v158_v33 = vsel %vm150_vm7, %v141_v19, %v157_v31  ;;  %v161_v34 = vsel %vm151_vm8, %v147_v23, 1326507024  ;;  %v135_v35 = vor.u32 %v134_v30, %v133_v28  ;;  %v73_v36 = vadd.s32 %v72_v24, %v68_v18 }
  0x20   :  { %v162_v37 = vsel %vm150_vm7, %v144_v21, %v161_v34  ;;  %v154_v38 = vsel %vm150_vm7, %v138_v10, %v153_v32  ;;  %v69_v17 = vadd.s32 %v612_v8, %v609_v4  ;;  %vm14_vm1 = vcmp.le.f32.partialorder %v13_v7, 0.7853982 }
  0x21   :  { %v152_v39 = vsel %vm148_vm6, %v132_v22, %v135_v35  ;;  %v156_v27 = vsel %vm148_vm6, %v135_v35, %v138_v10  ;;  %v163_v40 = vsel %vm149_vm10, %v160_v26, %v162_v37  ;;  %v74_v46 = vadd.s32 536870912, %v73_v36 }
  0x22   :  { %v159_v29 = vsel %vm149_vm10, %v156_v27, %v158_v33  ;;  %v631_v41 = vmul.u32.u64.low %v594_v25, %v163_v40  ;;  %v632_v42 = vmul.u32.u64.high %v594_v25, %v163_v40, %v631_v41  ;;  %v155_v43 = vsel %vm149_vm10, %v152_v39, %v154_v38 }
  0x23   :  { %v635_v44 = vmul.u32.u64.low %v594_v25, %v159_v29  ;;  %v636_v45 = vmul.u32.u64.high %v594_v25, %v159_v29, %v635_v44  ;;  %v171_v47 = vmul.u32 %v594_v25, %v155_v43  ;;  %v641_v49 = vshrl.u32 %v74_v46, 30 }
  0x24   :  { %vm208_vm5 = vweird.f32 %v582_v6 }
  0x25   :  { %vm173_vm11 = vc.u32 %v632_v42, %v635_v44  ;;  %v174_v48 = vadd.s32 1, %v636_v45  ;;  %v76_v52 = vshll.u32 %v641_v49, 30  ;;  %v172_v9 = vadd.s32 %v635_v44, %v632_v42 }
  0x26   :  { %v99_v40 = vsub.s32 4, %v641_v49 }
  0x27   :  { %v175_v50 = vsel %vm173_vm11, %v174_v48, %v636_v45  ;;  %v77_v55 = vsub.s32 %v73_v36, %v76_v52 }
  0x28   :  { %v176_v51 = vadd.s32 %v175_v50, %v171_v47  ;;  %v100_v42 = vsel %vm15_vm0, %v99_v40, %v641_v49 }
  0x29   :  { %v79_v58 = vsub.s32 0, %v77_v55  ;;  %v102_v45 = vsel %vm14_vm1, 0, %v100_v42 }
  0x2a   :  { %v177_v53 = vadd.s32 536870912, %v176_v51  ;;  %v312_v47 = vadd.s32 3, %v102_v45 }
  0x2b   :  { %v497_v25 = vmin.u32 %v79_v58, %v77_v55 }
  0x2c   :  { %v178_v54 = vshrl.u32 %v177_v53, 30  ;;  %v313_v50 = vand.u32 3, %v312_v47  ;;  %v106_v53 = vand.u32 3, %v102_v45 }
  0x2d   :  { %v81_v63 = vclz %v497_v25 }
  0x2e   :  { %v179_v56 = vshll.u32 %v178_v54, 30  ;;  %v202_v37 = vsub.s32 4, %v178_v54  ;;  %vm315_vm6 = vcmp.eq.s32.totalorder %v313_v50, 0  ;;  %vm318_vm7 = vcmp.eq.s32.totalorder %v313_v50, 2 }
  0x2f   :  { %v498_v0 = vadd.s32 4294967294, %v81_v63  ;;  %vm108_vm8 = vcmp.eq.s32.totalorder %v106_v53, 0  ;;  %vm111_vm9 = vcmp.eq.s32.totalorder %v106_v53, 2 }
  0x30   :  { %v180_v57 = vsub.s32 %v176_v51, %v179_v56  ;;  %v203_v27 = vsel %vm118_vm14, %v202_v37, %v178_v54 }
  0x31   :  { %vm499_vm13 = vcmp.lt.s32.totalorder %v498_v0, 0  ;;  %v205_v41 = vsel %vm117_vm15, 0, %v203_v27 }
  0x32   :  { %v182_v59 = vsub.s32 0, %v180_v57  ;;  %v84_v3 = vsel %vm499_vm13, 0, %v498_v0  ;;  %v416_v11 = vadd.s32 3, %v205_v41  ;;  %v209_v56 = vand.u32 3, %v205_v41 }
  0x33   :  { %v89_v13 = vsub.s32 4294967266, %v84_v3  ;;  %v85_v18 = vsub.s32 32, %v84_v3  ;;  %v86_v22 = vshll.u32 %v77_v55, %v84_v3  ;;  %vm107_vm13 = vcmp.lt.s32.totalorder %v106_v53, 2 }
  0x34   :  { %v501_v60 = vmin.u32 %v182_v59, %v180_v57  ;;  %v417_v46 = vand.u32 3, %v416_v11  ;;  %vm211_vm10 = vcmp.eq.s32.totalorder %v209_v56, 0  ;;  %vm214_vm11 = vcmp.eq.s32.totalorder %v209_v56, 2 }
  0x35   :  { %v90_v19 = vadd.s32 127, %v89_v13  ;;  %v87_v23 = vshrl.u32 %v69_v17, %v85_v18 }
  0x36   :  { %v184_v61 = vclz %v501_v60  ;;  %vm419_vm2 = vcmp.eq.s32.totalorder %v417_v46, 0  ;;  %vm422_vm3 = vcmp.eq.s32.totalorder %v417_v46, 2  ;;  %vm418_vm4 = vcmp.lt.s32.totalorder %v417_v46, 2 }
  0x37   :  { %v91_v26 = vshll.u32 %v90_v19, 23  ;;  %v88_v24 = vor.u32 %v87_v23, %v86_v22 }
  0x38   :  { %v502_v62 = vadd.s32 4294967294, %v184_v61 }
  0x39   :  { %v92_v31 = vor.u32 4788187, %v91_v26  ;;  %v95_v34 = vcvt.s32.f32 %v88_v24 }
  0x3a   :  { %vm503_vm12 = vcmp.lt.s32.totalorder %v502_v62, 0 }
  0x3b   :  { %v187_v1 = vsel %vm503_vm12, 0, %v502_v62  ;;  %v93_v33 = vand.u32 2147483647, %v92_v31  ;;  %vm314_vm12 = vcmp.lt.s32.totalorder %v313_v50, 2 }
  0x3c   :  { %v192_v2 = vsub.s32 4294967266, %v187_v1  ;;  %v188_v10 = vsub.s32 32, %v187_v1  ;;  %v189_v14 = vshll.u32 %v180_v57, %v187_v1 }
  0x3d   :  { %v96_v36 = vmul.f32 %v95_v34, %v93_v33 }
  0x3e   :  { %v193_v12 = vadd.s32 127, %v192_v2  ;;  %v190_v15 = vshrl.u32 %v172_v9, %v188_v10 }
  0x3f   :  { %v97_v8 = vxor.u32 2147483648, %v96_v36 }
  0x40   :  { %v194_v16 = vshll.u32 %v193_v12, 23  ;;  %v191_v20 = vor.u32 %v190_v15, %v189_v14 }
  0x41   :  { %v98_v39 = vsel %vm15_vm0, %v97_v8, %v96_v36  ;;  %vm451_vm0 = vcmask 1041408  }
  0x42   :  { %v195_v21 = vor.u32 4788187, %v194_v16  ;;  %v198_v30 = vcvt.s32.f32 %v191_v20  ;;  %v101_v29 = vsel %vm14_vm1, %v577_v5, %v98_v39  ;;  %vm489_vm1 = vcmask 1042432  }
  0x44   :  { %v196_v28 = vand.u32 2147483647, %v195_v21 }
  0x46   :  { %v199_v32 = vmul.f32 %v198_v30, %v196_v28 }
  0x48   :  { %v200_v35 = vxor.u32 2147483648, %v199_v32 }
  0x4a   :  { %v201_v4 = vsel %vm118_vm14, %v200_v35, %v199_v32  ;;  %vm210_vm14 = vcmp.lt.s32.totalorder %v209_v56, 2 }
  0x4b   :  { %v204_v38 = vsel %vm117_vm15, %v582_v6, %v201_v4  ;;  %vm105_vm15 = vweird.f32 %v577_v5 }
  0x4c   :  { %532 = vcosq.f32 %v204_v38 }
  0x4d   :  { %534 = vsinq.f32 %v204_v38 }
  0x4e   :  { %536 = vcosq.f32 %v101_v29 }
  0x4f   :  { %538 = vsinq.f32 %v101_v29 }
  0x56   :  { %v533_v43 = vpop.eup %532 }
  0x57   :  { %v535_v44 = vpop.eup %534  ;;  %v215_v7 = vxor.u32 2147483648, %v533_v43 }
  0x58   :  { %v212_v48 = vxor.u32 2147483648, %v535_v44  ;;  %v537_v51 = vpop.eup %536 }
  0x59   :  { %v539_v52 = vpop.eup %538  ;;  %v424_v55 = vsel %vm422_vm3, %v215_v7, %v535_v44  ;;  %v112_v57 = vxor.u32 2147483648, %v537_v51  ;;  %v216_v0 = vsel %vm214_vm11, %v215_v7, %v535_v44 }
  0x5a   :  { %v421_v54 = vsel %vm419_vm2, %v533_v43, %v212_v48  ;;  %v109_v49 = vxor.u32 2147483648, %v539_v52  ;;  %v213_v63 = vsel %vm211_vm10, %v533_v43, %v212_v48 }
  0x5b   :  { %v425_v58 = vsel %vm418_vm4, %v421_v54, %v424_v55  ;;  %v320_v60 = vsel %vm318_vm7, %v112_v57, %v539_v52  ;;  %v113_v62 = vsel %vm111_vm9, %v112_v57, %v539_v52  ;;  %v217_v10 = vsel %vm210_vm14, %v213_v63, %v216_v0 }
  0x5c   :  { %v317_v59 = vsel %vm315_vm6, %v537_v51, %v109_v49  ;;  %v426_v25 = vsel %vm208_vm5, nan, %v425_v58  ;;  %v110_v61 = vsel %vm108_vm8, %v537_v51, %v109_v49  ;;  %v218_v19 = vsel %vm208_vm5, nan, %v217_v10 }
  0x5d   :  { %v321_v2 = vsel %vm314_vm12, %v317_v59, %v320_v60  ;;  %v474_v3 = vrot.slane %v426_v25, 3  ;;  %v114_v9 = vsel %vm107_vm13, %v110_v61, %v113_v62  ;;  %v453_v28 = vrot.slane %v218_v19, 6 }
  0x5e   :  { %v322_v13 = vsel %vm105_vm15, nan, %v321_v2  ;;  %v115_v14 = vsel %vm105_vm15, nan, %v114_v9 }
  0x5f   :  { %v476_v15 = vmul.f32 %v474_v3, %v322_v13  ;;  %v477_v16 = vmul.f32 %v474_v3, %v426_v25  ;;  %v452_v26 = vrot.slane %v115_v14, 6 }
  0x61   :  { %v480_v23 = vrot.slane %v476_v15, 6  ;;  %v481_v30 = vrot.slane %v477_v16, 6  ;;  %v454_v32 = vsel %vm451_vm0, %v452_v26, %v453_v28 }
  0x62   :  { %v456_v8 = vmul.f32 %v454_v32, %v115_v14 }
  0x63   :  { %v482_v33 = vsel %vm451_vm0, %v480_v23, %v481_v30 }
  0x81   :  { %v437_v1 = vpop.permute.xlu0 %436  ;;  %v466_v20 = vpop.permute.xlu1 %465 }
  0x82   :  { %v438_v12 = vrot.slane %v437_v1, 5  ;;  %v468_v24 = vmul.f32 %v466_v20, %v322_v13 }
  0x84   :  { %v440_v21 = vmul.f32 %v438_v12, %v115_v14 }
  0x85   :  { %v444_v17 = vpop.permute.xlu0 %443  ;;  %v460_v34 = vpop.permute.xlu1 %459 }
  0x86   :  { %v445_v18 = vrot.slane %v444_v17, 5  ;;  %v462_v36 = vmul.f32 %v460_v34, %v454_v32 }
  0x88   :  { %v447_v22 = vmul.f32 %v445_v18, %v322_v13 }
  0x8a   :  { %v448_v5 = vsub.f32 %v440_v21, %v447_v22 }
  0x8c   :  { %v470_v31 = vrot.slane %v448_v5, 3 }
  0x8e   :  { %v472_v35 = vmul.f32 %v470_v31, %v468_v24 }
  0x90   :  { %v484_v4 = vmul.f32 %v482_v33, %v472_v35 }
  0x92   :  { %v485_v6 = vsub.f32 %v462_v36, %v484_v4 }
  0x94   :  { %v487_v37 = vrot.slane %v485_v6, 5 }
  0x96   :  { %v490_v38 = vsel %vm489_vm1, %v456_v8, %v487_v37 }
  0x97   :  { %491 = vst [vmem:[%s669_s2] sm:$0x3f] %v490_v38 }

</bundles_post_ra>
